<compile_context>
chip_gen: v6e
topology: v6e:2x2x1
jax: 0.10.0
libtpu: 0.0.40
codegen_flags: <defaults>
</compile_context>

<pallas_src>
import functools
import math

import jax
import jax.numpy as jnp
from jax.experimental import pallas as pl
from jax.experimental.pallas import tpu as pltpu


# ----------------------------------------------------------------------------
# 1) Tiled matmul kernel for the QKV input projection (no bias).
# ----------------------------------------------------------------------------
def _matmul_kernel(x_ref, w_ref, o_ref, acc_ref):
    @pl.when(pl.program_id(2) == 0)
    def _():
        acc_ref[...] = jnp.zeros_like(acc_ref)

    acc_ref[...] += jnp.dot(x_ref[...], w_ref[...],
                            preferred_element_type=jnp.float32)

    @pl.when(pl.program_id(2) == pl.num_programs(2) - 1)
    def _():
        o_ref[...] = acc_ref[...].astype(o_ref.dtype)


def matmul(x, w, *, tm=128, tn=128, tk=128):
    """x (M, K) @ w (K, N) -> (M, N), f32 accumulation in VMEM scratch."""
    M, K = x.shape
    K2, N = w.shape
    assert K == K2
    tm, tn, tk = min(tm, M), min(tn, N), min(tk, K)
    assert M % tm == 0 and N % tn == 0 and K % tk == 0, "tile sizes must divide"

    itemsize = jnp.dtype(x.dtype).itemsize
    cost = pl.CostEstimate(
        flops=2 * M * N * K,
        transcendentals=0,
        bytes_accessed=(M * K + K * N + M * N) * itemsize,
    )

    return pl.pallas_call(
        _matmul_kernel,
        out_shape=jax.ShapeDtypeStruct((M, N), x.dtype),
        grid_spec=pltpu.PrefetchScalarGridSpec(
            num_scalar_prefetch=0,
            grid=(M // tm, N // tn, K // tk),
            in_specs=[
                pl.BlockSpec((tm, tk), lambda i, j, k: (i, k)),
                pl.BlockSpec((tk, tn), lambda i, j, k: (k, j)),
            ],
            out_specs=pl.BlockSpec((tm, tn), lambda i, j, k: (i, j)),
            scratch_shapes=[pltpu.VMEM((tm, tn), jnp.float32)],
        ),
        compiler_params=pltpu.CompilerParams(
            dimension_semantics=("parallel", "parallel", "arbitrary")),
        cost_estimate=cost,
    )(x, w)


# ----------------------------------------------------------------------------
# 2) Flash attention with additive per-head relative bias.
#    Grid (B, L/tq, L/tk); each block carries ALL heads so the MXU sees batched
#    (tq, Dh) x (Dh, tk) matmuls and the kv axis is a resident-accumulator
#    reduction (online softmax in VMEM scratch).
# ----------------------------------------------------------------------------
def _flash_bias_kernel(q_ref, k_ref, v_ref, bias_ref, o_ref,
                       m_sc, l_sc, acc_sc, *, scale):
    ki = pl.program_id(2)

    @pl.when(ki == 0)
    def _():
        m_sc[...] = jnp.full_like(m_sc, -jnp.inf)
        l_sc[...] = jnp.zeros_like(l_sc)
        acc_sc[...] = jnp.zeros_like(acc_sc)

    q = q_ref[0]                       # (H, tq, Dh)
    k = k_ref[0]                       # (H, tk, Dh)
    v = v_ref[0]                       # (H, tk, Dh)
    b = bias_ref[...].astype(jnp.float32)  # (H, tq, tk)

    s = jnp.einsum("hqd,hkd->hqk", q, k,
                   preferred_element_type=jnp.float32)
    s = s * scale + b                  # (H, tq, tk), f32

    m_prev = m_sc[...]
    m_new = jnp.maximum(m_prev, s.max(axis=-1, keepdims=True))
    alpha = jnp.exp(m_prev - m_new)
    p = jnp.exp(s - m_new)
    l_sc[...] = alpha * l_sc[...] + p.sum(axis=-1, keepdims=True)
    acc_sc[...] = alpha * acc_sc[...] + jnp.einsum(
        "hqk,hkd->hqd", p.astype(v.dtype), v,
        preferred_element_type=jnp.float32)
    m_sc[...] = m_new

    @pl.when(ki == pl.num_programs(2) - 1)
    def _():
        o_ref[0] = (acc_sc[...] / l_sc[...]).astype(o_ref.dtype)


def flash_attention_bias(q, k, v, bias, *, tq=128, tk=128):
    """q, k, v: (B, H, L, Dh); bias: (H, L, L) additive. Returns (B, H, L, Dh)."""
    B, H, L, Dh = q.shape
    assert bias.shape == (H, L, L)
    tq, tk = min(tq, L), min(tk, L)
    assert L % tq == 0 and L % tk == 0, "L must be divisible by the tile sizes"
    scale = 1.0 / math.sqrt(Dh)

    itemsize = jnp.dtype(q.dtype).itemsize
    cost = pl.CostEstimate(
        flops=4 * B * H * L * L * Dh,                 # qk^T and pv matmuls
        transcendentals=B * H * L * L,                # exp
        bytes_accessed=(4 * B * H * L * Dh + H * L * L) * itemsize,
    )

    kern = functools.partial(_flash_bias_kernel, scale=scale)
    return pl.pallas_call(
        kern,
        out_shape=jax.ShapeDtypeStruct((B, H, L, Dh), q.dtype),
        grid_spec=pltpu.PrefetchScalarGridSpec(
            num_scalar_prefetch=0,
            grid=(B, L // tq, L // tk),
            in_specs=[
                pl.BlockSpec((1, H, tq, Dh), lambda b, qi, ki: (b, 0, qi, 0)),
                pl.BlockSpec((1, H, tk, Dh), lambda b, qi, ki: (b, 0, ki, 0)),
                pl.BlockSpec((1, H, tk, Dh), lambda b, qi, ki: (b, 0, ki, 0)),
                pl.BlockSpec((H, tq, tk), lambda b, qi, ki: (0, qi, ki)),
            ],
            out_specs=pl.BlockSpec((1, H, tq, Dh),
                                   lambda b, qi, ki: (b, 0, qi, 0)),
            scratch_shapes=[
                pltpu.VMEM((H, tq, 1), jnp.float32),    # running max m
                pltpu.VMEM((H, tq, 1), jnp.float32),    # running denom l
                pltpu.VMEM((H, tq, Dh), jnp.float32),   # output accumulator
            ],
        ),
        compiler_params=pltpu.CompilerParams(
            dimension_semantics=("parallel", "parallel", "arbitrary")),
        cost_estimate=cost,
    )(q, k, v, bias)


# ----------------------------------------------------------------------------
# 3) Full Attention.forward
# ----------------------------------------------------------------------------
def attention_forward(x, w_in, rel_bias, *, num_heads, tq=128, tk=128):
    """x: (B, L, d); w_in: (3d, d) PyTorch Linear weight (no bias);
    rel_bias: (H, L, L) additive per-head position bias. Returns (B, L, d)."""
    B, L, d = x.shape
    assert d % num_heads == 0
    Dh = d // num_heads

    # QKV projection: (B*L, d) @ (d, 3d) -> (B*L, 3d), split order [k | v | q].
    proj = matmul(x.reshape(B * L, d), jnp.transpose(w_in))
    proj = proj.reshape(B, L, 3 * d)

    def split_heads(t):
        return t.reshape(B, L, num_heads, Dh).transpose(0, 2, 1, 3)

    k = split_heads(proj[..., :d])
    v = split_heads(proj[..., d:2 * d])
    q = split_heads(proj[..., 2 * d:])

    o = flash_attention_bias(q, k, v, rel_bias, tq=tq, tk=tk)  # (B, H, L, Dh)
    return o.transpose(0, 2, 1, 3).reshape(B, L, d)


# ----------------------------------------------------------------------------
# Pure-JAX reference (same math, naive softmax) for correctness checking.
# ----------------------------------------------------------------------------
def _reference_forward(x, w_in, rel_bias, *, num_heads):
    B, L, d = x.shape
    Dh = d // num_heads
    proj = jnp.einsum("bld,ed->ble", x, w_in)   # (B, L, 3d)
    k = proj[..., :d]
    v = proj[..., d:2 * d]
    q = proj[..., 2 * d:]

    def split_heads(t):
        return t.reshape(B, L, num_heads, Dh).transpose(0, 2, 1, 3)

    q, k, v = split_heads(q), split_heads(k), split_heads(v)
    scale = 1.0 / math.sqrt(Dh)
    s = jnp.einsum("bhqd,bhkd->bhqk", q, k) * scale + rel_bias[None]
    p = jax.nn.softmax(s, axis=-1)
    o = jnp.einsum("bhqk,bhkd->bhqd", p, v)
    return o.transpose(0, 2, 1, 3).reshape(B, L, d)


if __name__ == "__main__":
    B, L, d_model, num_heads = 2, 256, 128, 4

    key = jax.random.PRNGKey(0)
    kx, kw, kb = jax.random.split(key, 3)
    x = jax.random.normal(kx, (B, L, d_model), dtype=jnp.float32)
    # PyTorch nn.Linear(d_model, 3*d_model, bias=False) weight: (3d, d)
    w_in = (1.0 / math.sqrt(d_model)) * jax.random.normal(
        kw, (3 * d_model, d_model), dtype=jnp.float32)
    # TODO(synk): stand-in for Tisa(seq_len=L) output: per-head (L, L) additive bias.
    rel_bias = 0.1 * jax.random.normal(
        kb, (num_heads, L, L), dtype=jnp.float32)

    y = attention_forward(x, w_in, rel_bias, num_heads=num_heads)
    y = jax.block_until_ready(y)

    y_ref = _reference_forward(x, w_in, rel_bias, num_heads=num_heads)
    assert y.shape == (B, L, d_model)
    assert jnp.allclose(y, y_ref, atol=1e-3, rtol=1e-3), "mismatch vs reference"

    print("KERNEL_OK")
</pallas_src>

<mosaic_0001>
module attributes {stable_mosaic.version = 11 : i64} {
  func.func @_matmul_kernel(%arg0: i32, %arg1: i32, %arg2: i32, %arg3: memref<128x128xf32, #tpu.memory_space<vmem>>, %arg4: memref<128x128xf32, #tpu.memory_space<vmem>>, %arg5: memref<128x128xf32, #tpu.memory_space<vmem>>, %arg6: memref<128x128xf32, #tpu.memory_space<vmem>>) attributes {dimension_semantics = [#tpu.dimension_semantics<parallel>, #tpu.dimension_semantics<parallel>, #tpu.dimension_semantics<arbitrary>], iteration_bounds = array<i64: 4, 3, 1>, scalar_prefetch = 0 : i64, scratch_operands = 1 : i64, tpu.core_type = #tpu.core_type<tc>, window_params = [{transform_indices = @transform_0, window_bounds = array<i64: 128, 128>}, {transform_indices = @transform_1, window_bounds = array<i64: 128, 128>}, {transform_indices = @transform_2, window_bounds = array<i64: 128, 128>}]} {
    %c0_i32 = arith.constant 0 : i32
    %0 = arith.cmpi eq, %arg2, %c0_i32 : i32
    %1 = arith.extui %0 : i1 to i32
    %c0_i32_0 = arith.constant 0 : i32
    %2 = arith.cmpi ne, %1, %c0_i32_0 : i32
    scf.if %2 {
      %cst_10 = arith.constant 0.000000e+00 : f32
      %12 = vector.broadcast %cst_10 : f32 to vector<128x128xf32>
      %c0_11 = arith.constant 0 : index
      %c0_12 = arith.constant 0 : index
      %13 = vector.load %arg6[%c0_11, %c0_12] : memref<128x128xf32, #tpu.memory_space<vmem>>, vector<128x128xf32>
      tpu.vector_store %arg6[%c0_11, %c0_12], %12 {strides = array<i32>} : memref<128x128xf32, #tpu.memory_space<vmem>>, vector<128x128xf32>,
    } else {
    }
    %c0 = arith.constant 0 : index
    %c0_1 = arith.constant 0 : index
    %3 = vector.load %arg6[%c0, %c0_1] : memref<128x128xf32, #tpu.memory_space<vmem>>, vector<128x128xf32>
    %c0_2 = arith.constant 0 : index
    %c0_3 = arith.constant 0 : index
    %4 = vector.load %arg3[%c0_2, %c0_3] : memref<128x128xf32, #tpu.memory_space<vmem>>, vector<128x128xf32>
    %c0_4 = arith.constant 0 : index
    %c0_5 = arith.constant 0 : index
    %5 = vector.load %arg4[%c0_4, %c0_5] : memref<128x128xf32, #tpu.memory_space<vmem>>, vector<128x128xf32>
    %cst = arith.constant dense<0.000000e+00> : vector<128x128xf32>
    %6 = tpu.matmul %4, %5, %cst {dimension_numbers = #tpu.dot_dimension_numbers<[1], [0], [0], [1], [0, 0, 1, 1], [], []>} : vector<128x128xf32>, vector<128x128xf32>, vector<128x128xf32> -> vector<128x128xf32>
    %7 = arith.addf %3, %6 : vector<128x128xf32>
    %c0_6 = arith.constant 0 : index
    %c0_7 = arith.constant 0 : index
    %8 = vector.load %arg6[%c0_6, %c0_7] : memref<128x128xf32, #tpu.memory_space<vmem>>, vector<128x128xf32>
    tpu.vector_store %arg6[%c0_6, %c0_7], %7 {strides = array<i32>} : memref<128x128xf32, #tpu.memory_space<vmem>>, vector<128x128xf32>,
    %c0_i32_8 = arith.constant 0 : i32
    %9 = arith.cmpi eq, %arg2, %c0_i32_8 : i32
    %10 = arith.extui %9 : i1 to i32
    %c0_i32_9 = arith.constant 0 : i32
    %11 = arith.cmpi ne, %10, %c0_i32_9 : i32
    scf.if %11 {
      %c0_10 = arith.constant 0 : index
      %c0_11 = arith.constant 0 : index
      %12 = vector.load %arg6[%c0_10, %c0_11] : memref<128x128xf32, #tpu.memory_space<vmem>>, vector<128x128xf32>
      %c0_12 = arith.constant 0 : index
      %c0_13 = arith.constant 0 : index
      %13 = vector.load %arg5[%c0_12, %c0_13] : memref<128x128xf32, #tpu.memory_space<vmem>>, vector<128x128xf32>
      tpu.vector_store %arg5[%c0_12, %c0_13], %12 {strides = array<i32>} : memref<128x128xf32, #tpu.memory_space<vmem>>, vector<128x128xf32>,
    } else {
    }
    return
  }
  func.func @transform_0(%arg0: i32, %arg1: i32, %arg2: i32) -> (i32, i32) {
    %c0_i32 = arith.constant 0 : i32
    return %arg0, %arg2 : i32, i32
  }
  func.func @transform_1(%arg0: i32, %arg1: i32, %arg2: i32) -> (i32, i32) {
    %c0_i32 = arith.constant 0 : i32
    return %arg2, %arg1 : i32, i32
  }
  func.func @transform_2(%arg0: i32, %arg1: i32, %arg2: i32) -> (i32, i32) {
    %c0_i32 = arith.constant 0 : i32
    return %arg0, %arg1 : i32, i32
  }
}

</mosaic_0001>

<bundles_post_ra>
// kernel: tpu_custom_call.1
= control target key start
LH: loop header
LB: loop body
LE: loop exit
PB: predicated region body
PF: predicated region fallthrough
CT: control target
= control target key end

     0   :  { %s1500_s0 = inlined_call_operand.hbm [shape: f32[512,128], index: 0, kind: input, shape index: {}]   ;;  %s1501_s1 = inlined_call_operand.hbm [shape: f32[128,384], index: 1, kind: input, shape index: {}]   ;;  %s1502_s2 = inlined_call_operand.hbm [shape: f32[512,384], index: 2, kind: output, shape index: {}]  }
   0x1   :  { %1512 = sst [smem:[#allocation18_spill]] %s1500_s0 }
   0x2   :  { %1513 = sst [smem:[#allocation19_spill]] %s1502_s2 }
   0x3   :  { %7 = vsyncpa [#allocation4], 0 }
   0x4   :  { %9 = vsyncpa [#allocation4 + $0x1], 0 }
   0x5   :  { %10 = vsyncpa [#allocation7], 0 }
   0x6   :  { %12 = vsyncpa [#allocation7 + $0x1], 0 }
   0x7   :  { %13 = vsyncpa [#allocation5], 0 }
   0x8   :  { %15 = vsyncpa [#allocation5 + $0x1], 0  ;;  %s1153_s9 = smov 0   ;;  %s1155_s10 = smov 0  }
   0x9   :  { %s1157_s11 = smov 0   ;;  %s1159_s12 = smov 0  }
   0xa   :  { %s1161_s13 = smov 0   ;;  %s1163_s14 = smov 0  }
   0xb   :  { %s1165_s15 = smov 0   ;;  %s1167_s16 = smov 0  }
   0xc   :  { %s1169_s17 = smov 0   ;;  %s1171_s18 = smov 0  }
   0xd   :  { %s1173_s19 = smov 0   ;;  %s1175_s20 = smov 0  }
   0xe   :  { %s1177_s21 = smov 0   ;;  %s1179_s22 = smov 0  }
   0xf LB: > { %1514 = sst [smem:[#allocation12_spill]] %s1111_s18  ;;  %s645_s23 = sadd.s32 4294967295, %s1127_s22   ;;  %s1127_s22 = sphi %s1179_s22, %s21_s22   ;;  %s1123_s21 = sphi %s1177_s21, %s1544_s21   ;;  %s1119_s20 = sphi %s1175_s20, %s1556_s20   ;;  %s1115_s19 = sphi %s1173_s19, %s1542_s19   ;;  %s1111_s18 = sphi %s1171_s18, %s1555_s18   ;;  %s1107_s17 = sphi %s1169_s17, %s1554_s17   ;;  %s1103_s16 = sphi %s1167_s16, %s1553_s16   ;;  %s1099_s15 = sphi %s1165_s15, %s1552_s15   ;;  %s1095_s14 = sphi %s1163_s14, %s1551_s14   ;;  %s1091_s13 = sphi %s1161_s13, %s1550_s13   ;;  %s1087_s12 = sphi %s1159_s12, %s1549_s12   ;;  %s1083_s11 = sphi %s1157_s11, %s1548_s11   ;;  %s1079_s10 = sphi %s1155_s10, %s1547_s10   ;;  %s1075_s9 = sphi %s1153_s9, %s1546_s9  }
  0x10   : > { %1515 = sst [smem:[#allocation13_spill]] %s1123_s21  ;;  %p56_p0 = scmp.ne.s32.totalorder %s1107_s17, %s1103_s16 }
  0x11   : > { %p57_p1 = scmp.eq.s32.totalorder %s1127_s22, 0  ;;  %p62_p2 = scmp.ne.s32.totalorder %s1103_s16, %s1099_s15 }
  0x12   : > { %p1228_p3 = scmp.eq.s32.totalorder %s645_s23, 0  ;;  %p1232_p4 = scmp.eq.s32.totalorder %s645_s23, 11 }
  0x13   : > { %p58_p5 = por %p57_p1, %p56_p0  ;;  %p803_p7 = scmp.lt.s32.totalorder %s1127_s22, 12 }
  0x14   : > { %p1240_p6 = por %p1228_p3, %p62_p2  ;;  %s142_s29 = sand.u32 1, %s1107_s17  }
  0x15   : > { %s664_s30 = sshll.u32 %s1123_s21, 11  ;;  %s649_s3 = sshll.u32 %s142_s29, 7 }
  0x16   : > { %s1519_s0 = sld [smem:[#allocation18_spill]]  ;;  %s146_s7 = scalar_lea.vmem [#allocation3], %s649_s3 }
  0x17   : > { %s154_s8 = sshll.u32 %s146_s7, 4  ;;  %p1252_p8 = pnand %p803_p7, %p58_p5  ;;  %s155_s8 = int_to_ptr.vmem [resolvable:$true] %s154_s8 }
  0x18   : > { %s143_s23 = scalar_lea.sflag [#allocation4], %s142_s29  ;;  %s936_s25 = scalar_lea.vmem %s155_s8, 2048 }
  0x19   : > { %p925_p9 = pneg %p1252_p8  ;;  %p937_p10 = scmp.ne.s32.totalorder %s155_s8, %s936_s25 }
  0x1a   : > { %s1129_s24 = smov [#allocation3]  }
  0x1b   : > { %p939_p11 = pnand %p937_p10, %p925_p9  ;;  %s941_s2 = sshll.u32 %s1129_s24, 4  ;;  %s942_s2 = int_to_ptr.vmem [resolvable:$false] %s941_s2 }
  0x1c   : > { %s153_s6 = scalar_lea.hbm %s1519_s0, %s664_s30  ;;  %s943_s30 = scalar_lea.vmem %s942_s2, 4096 }
  0x1d   : > { %p940_p12 = pneg %p939_p11  ;;  %p944_p13 = scmp.lt.s32.totalorder %s155_s8, %s942_s2 }
  0x1e   : > { %p945_p0 = scmp.lt.s32.totalorder %s943_s30, %s936_s25 }
  0x20   : > { %p946_p2 = por %p945_p0, %p944_p13 }
  0x22   : > { %p947_p5 = pnand %p946_p2, %p940_p12 }
  0x24   : > { %950 = shalt.err (!%p947_p5)
}
  0x25   : > { %s1504_s3 = smov 128   ;;  %s1505_s2 = smov 8  }
  0x26   : > { %795 = dma.hbm_to_vmem [thread:$0]  (!%p1252_p8), %s153_s6, 2048, %s155_s8, %s143_s23, %s1504_s3, %s1504_s3, %s1505_s2  }
  0x27   : > { %p654_p9 = scmp.ge.s32.totalorder %s1127_s22, 1  ;;  %p185_p10 = scmp.lt.s32.totalorder %s1127_s22, 13 }
  0x28   : > { %s646_s25 = sadd.s32 4294967294, %s1127_s22   ;;  %s36_s29 = sadd.s32 1, %s1119_s20 }
  0x29   : > { %p1265_p11 = pnand %p654_p9, %p185_p10  ;;  %s77_s4 = sadd.s32 1, %s1095_s14 }
  0x2a   : > { %p38_p12 = scmp.ge.s32.totalorder %s36_s29, 3  ;;  %p84_p13 = scmp.ne.s32.totalorder %s1095_s14, %s1091_s13 }
  0x2b   : > { %p90_p0 = scmp.ne.s32.totalorder %s1091_s13, %s1087_s12  ;;  %s105_s5 = sadd.s32 1, %s1083_s11 }
  0x2c   : > { %s1558_s29 = smov (%p38_p12, %s36_s29), 0  ;;  %s1523_s6 = sadd.s32 1, %s1123_s21 }
  0x2d   : > { %1522 = sst [smem:[#allocation14_spill]] %s1558_s29  ;;  %s1560_s6 = smov (!%p38_p12, %s1523_s6), %s1123_s21 }
  0x2e   : > { %s73_s7 = ssub.s32 %s1119_s20, %s1558_s29  ;;  %p1286_p8 = por %p84_p13, %p57_p1 }
  0x2f   : > { %p42_p2 = scmp.ge.s32.totalorder %s1560_s6, 4  ;;  %p75_p5 = scmp.eq.s32.totalorder %s73_s7, 0 }
  0x30   : > { %p1292_p9 = por %p90_p0, %p1228_p3  ;;  %p115_p10 = scmp.ne.s32.totalorder %s1083_s11, %s1079_s10 }
  0x31   : > { %s1562_s6 = smov (%p42_p2, %s1560_s6), 0  ;;  %p121_p13 = scmp.ne.s32.totalorder %s1079_s10, %s1075_s9 }
  0x32   : > { %1526 = sst [smem:[#allocation15_spill]] %s1562_s6  ;;  %s44_s23 = ssub.s32 %s1123_s21, %s1562_s6 }
  0x33   : > { %s1301_s15 = scalar_select %p75_p5, %s1095_s14, %s77_s4  }
  0x34   : > { %p1307_p1 = por %p1232_p4, %p115_p10  ;;  %p47_p12 = scmp.eq.s32.totalorder %s44_s23, 0 }
  0x35   : > { %1527 = sst [smem:[#allocation16_spill]] %s1301_s15  ;;  %s102_s26 = sor.u32 %s73_s7, %s44_s23 }
  0x36   : > { %s1528_s30 = scalar_select %p1307_p1, 1, 0 }
  0x37   : > { %p103_p3 = scmp.eq.s32.totalorder %s102_s26, 0  ;;  %s1530_s3 = sadd.s32 1, %s1107_s17 }
  0x38   : > { %1529 = sst [smem:[#allocation17_spill]] %s1528_s30  ;;  %p122_p0 = scmp.eq.s32.totalorder %s646_s25, 11 }
  0x39   : > { %s1316_s2 = scalar_select %p47_p12, %s1107_s17, %s1530_s3  }
  0x3a   : > { %s1319_s0 = scalar_select %p103_p3, %s1083_s11, %s105_s5  }
  0x3b   : > { %s164_s4 = sand.u32 1, %s1095_s14   ;;  %p1322_p2 = por %p122_p0, %p121_p13 }
  0x3c   : > { %s652_s29 = sshll.u32 %s164_s4, 7  ;;  %s653_s6 = sshll.u32 %s1119_s20, 7 }
  0x3d   : > { %s1531_s27 = scalar_select %p1322_p2, 1, 0 }
  0x3e   : > { %s168_s21 = scalar_lea.vmem [#allocation6], %s652_s29  ;;  %s176_s7 = scalar_lea.hbm %s1501_s1, %s653_s6 }
  0x3f   : > { %s177_s15 = sshll.u32 %s168_s21, 4  ;;  %p1334_p4 = pnand %p803_p7, %p1286_p8  ;;  %s178_s15 = int_to_ptr.vmem [resolvable:$true] %s177_s15 }
  0x40   : > { %s165_s25 = scalar_lea.sflag [#allocation7], %s164_s4  ;;  %s964_s5 = scalar_lea.vmem %s178_s15, 2048 }
  0x41   : > { %p953_p5 = pneg %p1334_p4  ;;  %p965_p10 = scmp.ne.s32.totalorder %s178_s15, %s964_s5 }
  0x42   : > { %s1132_s21 = smov [#allocation6]  }
  0x43   : > { %p967_p12 = pnand %p965_p10, %p953_p5  ;;  %s969_s29 = sshll.u32 %s1132_s21, 4  ;;  %s970_s29 = int_to_ptr.vmem [resolvable:$false] %s969_s29 }
  0x44   : > { %s971_s18 = scalar_lea.vmem %s970_s29, 4096  ;;  %p972_p13 = scmp.lt.s32.totalorder %s178_s15, %s970_s29 }
  0x45   : > { %p968_p3 = pneg %p967_p12  ;;  %p973_p0 = scmp.lt.s32.totalorder %s971_s18, %s964_s5 }
  0x47   : > { %p974_p2 = por %p973_p0, %p972_p13 }
  0x49   : > { %p975_p1 = pnand %p974_p2, %p968_p3 }
  0x4b   : > { %978 = shalt.err (!%p975_p1)
}
  0x4c   : > { %s1133_s6 = smov 384   ;;  %s1533_s8 = smov 8  }
  0x4d   : > { %s1534_s23 = smov 128   ;;  %189 = sbr.rel (%p1265_p11) target bundleno = 343 (0x157), region = 28 }
  0x4e   : > { %798 = dma.hbm_to_vmem [thread:$0]  (!%p1334_p4), %s176_s7, 2048, %s178_s15, %s165_s25, %s1133_s6, %s1534_s23, %s1533_s8  }
  0x4f   : > { %s191_s30 = sand.u32 (!%p1265_p11), 1, %s1103_s16  }
  0x50   : > { %s655_s26 = sshll.u32 (!%p1265_p11), %s191_s30, 7  ;;  %s192_s4 = scalar_lea.sflag (!%p1265_p11), [#allocation4], %s191_s30 }
  0x51   : > { %s1347_s21 = scalar_lea.vmem (!%p1265_p11), [#allocation3], %s655_s26 }
  0x52   : > { %1062 = dma.done.wait (%p1240_p6), %s192_s4, 2048  }
  0x53   : > { %1064 = vsyncadd (%p1240_p6), %s192_s4, 4294965248  ;;  %s200_s3 = sand.u32 1, %s1091_s13  }
  0x54   : > { %s656_s5 = sshll.u32 %s200_s3, 7  ;;  %s201_s15 = scalar_lea.sflag [#allocation7], %s200_s3 }
  0x55   : > { %s1354_s7 = scalar_lea.vmem [#allocation6], %s656_s5 }
  0x56   : > { %1066 = dma.done.wait (%p1292_p9), %s201_s15, 2048  }
  0x57   : > { %1068 = vsyncadd (%p1292_p9), %s201_s15, 4294965248  ;;  %v300_v0 = vld [vmem:[%s1354_s7 + $0x78] sm:$0xff]  ;;  %v299_v1 = vld [vmem:[%s1354_s7 + $0x70] sm:$0xff]  ;;  %s227_s28 = sand.u32 1, %s1079_s10   ;;  %s1535_s24 = sld [smem:[#allocation12_spill]] }
  0x58   : > { %697 = vmatprep.subr.mxu0 %v300_v0  ;;  %753 = vmatprep.subr.mxu1 %v300_v0  ;;  %v298_v2 = vld [vmem:[%s1354_s7 + $0x68] sm:$0xff]  ;;  %v297_v3 = vld [vmem:[%s1354_s7 + $0x60] sm:$0xff]  ;;  %v296_v4 = vld [vmem:[%s1354_s7 + $0x58] sm:$0xff]  ;;  %s657_s12 = sshll.u32 %s227_s28, 7  ;;  %s785_s29 = smul.u32 48, %s1115_s19 }
  0x59   : > { %698 = vmatpush3.msra.mxu0 %v300_v0  ;;  %769 = vmatpush3.msra.mxu1 %v300_v0  ;;  %v295_v5 = vld [vmem:[%s1354_s7 + $0x50] sm:$0xff]  ;;  %v294_v6 = vld [vmem:[%s1354_s7 + $0x48] sm:$0xff]  ;;  %v293_v7 = vld [vmem:[%s1354_s7 + $0x40] sm:$0xff]  ;;  %s1395_s25 = scalar_lea.vmem [#allocation8], %s657_s12  ;;  %s1536_s8 = sld [smem:[#allocation17_spill]] }
  0x5a   : > { %699 = vmatprep.subr.mxu0 %v299_v1  ;;  %754 = vmatprep.subr.mxu1 %v299_v1  ;;  %v292_v8 = vld [vmem:[%s1354_s7 + $0x38] sm:$0xff]  ;;  %v291_v9 = vld [vmem:[%s1354_s7 + $0x30] sm:$0xff]  ;;  %v290_v10 = vld [vmem:[%s1354_s7 + $0x28] sm:$0xff]  ;;  %s529_s6 = sshll.u32 %s1395_s25, 4  ;;  %s1537_s26 = sld [smem:[#allocation19_spill]]  ;;  %s1417_s6 = int_to_ptr.vmem [resolvable:$true] %s529_s6 }
  0x5b   : > { %700 = vmatpush3.msra.mxu0 %v299_v1  ;;  %770 = vmatpush3.msra.mxu1 %v299_v1  ;;  %v289_v11 = vld [vmem:[%s1354_s7 + $0x20] sm:$0xff]  ;;  %v288_v12 = vld [vmem:[%s1354_s7 + $0x18] sm:$0xff]  ;;  %v287_v13 = vld [vmem:[%s1354_s7 + $0x10] sm:$0xff]  ;;  %s979_s3 = scalar_lea.vmem %s1417_s6, 2048  ;;  %s1134_s5 = smov [#allocation8]  }
  0x5c   : > { %701 = vmatprep.subr.mxu0 %v298_v2  ;;  %755 = vmatprep.subr.mxu1 %v298_v2  ;;  %v286_v14 = vld [vmem:[%s1354_s7 + $0x8] sm:$0xff]  ;;  %v285_v15 = vld [vmem:[%s1354_s7] sm:$0xff]  ;;  %v271_v20 = vld [vmem:[%s1347_s21 + $0x10] sm:$0xff]  ;;  %p980_p6 = scmp.ne.s32.totalorder %s1417_s6, %s979_s3  ;;  %s983_s15 = sshll.u32 %s1134_s5, 4  ;;  %s984_s15 = int_to_ptr.vmem [resolvable:$false] %s983_s15 }
  0x5d   : > { %702 = vmatpush3.msra.mxu0 %v298_v2  ;;  %771 = vmatpush3.msra.mxu1 %v298_v2  ;;  %v269_v16 = vld [vmem:[%s1347_s21] sm:$0xff]  ;;  %v270_v18 = vld [vmem:[%s1347_s21 + $0x8] sm:$0xff]  ;;  %v279_v21 = vld [vmem:[%s1347_s21 + $0x50] sm:$0xff]  ;;  %s526_s18 = sadd.s32 %s1535_s24, %s785_s29  ;;  %s985_s7 = scalar_lea.vmem %s984_s15, 4096 }
  0x5e   : > { %703 = vmatprep.subr.mxu0 %v297_v3  ;;  %756 = vmatprep.subr.mxu1 %v297_v3  ;;  %v277_v17 = vld [vmem:[%s1347_s21 + $0x40] sm:$0xff]  ;;  %v278_v19 = vld [vmem:[%s1347_s21 + $0x48] sm:$0xff]  ;;  %v272_v22 = vld [vmem:[%s1347_s21 + $0x18] sm:$0xff]  ;;  %s661_s19 = sshll.u32 %s526_s18, 7  ;;  %p986_p9 = scmp.lt.s32.totalorder %s1417_s6, %s984_s15 }
  0x5f   : > { %704 = vmatpush3.msra.mxu0 %v297_v3  ;;  %772 = vmatpush3.msra.mxu1 %v297_v3  ;;  %v280_v23 = vld [vmem:[%s1347_s21 + $0x58] sm:$0xff]  ;;  %v273_v24 = vld [vmem:[%s1347_s21 + $0x20] sm:$0xff]  ;;  %v274_v26 = vld [vmem:[%s1347_s21 + $0x28] sm:$0xff]  ;;  %p1538_p7 = scmp.ne.s32.totalorder %s1536_s8, 0  ;;  %p987_p1 = scmp.lt.s32.totalorder %s985_s7, %s979_s3 }
  0x60   : > { %705 = vmatprep.subr.mxu0 %v296_v4  ;;  %757 = vmatprep.subr.mxu1 %v296_v4  ;;  %v281_v25 = vld [vmem:[%s1347_s21 + $0x60] sm:$0xff]  ;;  %v282_v27 = vld [vmem:[%s1347_s21 + $0x68] sm:$0xff]  ;;  %v275_v28 = vld [vmem:[%s1347_s21 + $0x30] sm:$0xff]  ;;  %s1415_s4 = scalar_lea.hbm %s1537_s26, %s661_s19 }
  0x61   : > { %706 = vmatpush3.msra.mxu0 %v296_v4  ;;  %773 = vmatpush3.msra.mxu1 %v296_v4  ;;  %v283_v29 = vld [vmem:[%s1347_s21 + $0x70] sm:$0xff]  ;;  %v276_v30 = vld [vmem:[%s1347_s21 + $0x38] sm:$0xff]  ;;  %p981_p11 = pnand %p980_p6, %p1538_p7  ;;  %p988_p2 = por %p987_p1, %p986_p9 }
  0x62   : > { %707 = vmatprep.subr.mxu0 %v295_v5  ;;  %758 = vmatprep.subr.mxu1 %v295_v5  ;;  %v284_v31 = vld [vmem:[%s1347_s21 + $0x78] sm:$0xff]  ;;  %s1425_s21 = scalar_lea.sflag [#allocation5], %s227_s28 }
  0x63   : > { %708 = vmatpush3.msra.mxu0 %v295_v5  ;;  %774 = vmatpush3.msra.mxu1 %v295_v5  ;;  %p982_p8 = pneg %p981_p11 }
  0x64   : > { %709 = vmatprep.subr.mxu0 %v294_v6  ;;  %759 = vmatprep.subr.mxu1 %v294_v6 }
  0x65   : > { %710 = vmatpush3.msra.mxu0 %v294_v6  ;;  %775 = vmatpush3.msra.mxu1 %v294_v6  ;;  %p989_p4 = pnand %p988_p2, %p982_p8 }
  0x66   : > { %711 = vmatprep.subr.mxu0 %v293_v7  ;;  %760 = vmatprep.subr.mxu1 %v293_v7 }
  0x67   : > { %712 = vmatpush3.msra.mxu0 %v293_v7  ;;  %776 = vmatpush3.msra.mxu1 %v293_v7 }
  0x68   : > { %713 = vmatprep.subr.mxu0 %v292_v8  ;;  %761 = vmatprep.subr.mxu1 %v292_v8 }
  0x69   : > { %714 = vmatpush3.msra.mxu0 %v292_v8  ;;  %777 = vmatpush3.msra.mxu1 %v292_v8 }
  0x6a   : > { %715 = vmatprep.subr.mxu0 %v291_v9  ;;  %762 = vmatprep.subr.mxu1 %v291_v9 }
  0x6b   : > { %716 = vmatpush3.msra.mxu0 %v291_v9  ;;  %778 = vmatpush3.msra.mxu1 %v291_v9 }
  0x6c   : > { %717 = vmatprep.subr.mxu0 %v290_v10  ;;  %763 = vmatprep.subr.mxu1 %v290_v10 }
  0x6d   : > { %718 = vmatpush3.msra.mxu0 %v290_v10  ;;  %779 = vmatpush3.msra.mxu1 %v290_v10 }
  0x6e   : > { %719 = vmatprep.subr.mxu0 %v289_v11  ;;  %764 = vmatprep.subr.mxu1 %v289_v11 }
  0x6f   : > { %720 = vmatpush3.msra.mxu0 %v289_v11  ;;  %780 = vmatpush3.msra.mxu1 %v289_v11 }
  0x70   : > { %721 = vmatprep.subr.mxu0 %v288_v12  ;;  %765 = vmatprep.subr.mxu1 %v288_v12 }
  0x71   : > { %722 = vmatpush3.msra.mxu0 %v288_v12  ;;  %781 = vmatpush3.msra.mxu1 %v288_v12 }
  0x72   : > { %723 = vmatprep.subr.mxu0 %v287_v13  ;;  %766 = vmatprep.subr.mxu1 %v287_v13 }
  0x73   : > { %724 = vmatpush3.msra.mxu0 %v287_v13  ;;  %782 = vmatpush3.msra.mxu1 %v287_v13 }
  0x74   : > { %725 = vmatprep.subr.mxu0 %v286_v14  ;;  %767 = vmatprep.subr.mxu1 %v286_v14 }
  0x75   : > { %726 = vmatpush3.msra.mxu0 %v286_v14  ;;  %783 = vmatpush3.msra.mxu1 %v286_v14 }
  0x76   : > { %727 = vmatprep.subr.mxu0 %v285_v15  ;;  %768 = vmatprep.subr.mxu1 %v285_v15 }
  0x77   : > { %728 = vmatpush3.msra.mxu0 %v285_v15  ;;  %784 = vmatpush3.msra.mxu1 %v285_v15 }
  0x78   : > { %729 = vmatprep.mubr.f32.mxu0 %v269_v16  ;;  %741 = vmatprep.mubr.f32.mxu1 %v277_v17 }
  0x79   : > { %730 = vmatmul.mubr.f32.vlgmr.msra.gmra.mxu0 %v270_v18  ;;  %742 = vmatmul.mubr.f32.vlgmr.msra.gmra.mxu1 %v278_v19 }
  0x7a   : > { %732 = vmatprep.mubr.f32.mxu0 %v271_v20  ;;  %744 = vmatprep.mubr.f32.mxu1 %v279_v21 }
  0x7d   : > { %733 = vmatmul.mubr.f32.gmra.mxu0 %v272_v22  ;;  %745 = vmatmul.mubr.f32.gmra.mxu1 %v280_v23 }
  0x7e   : > { %735 = vmatprep.mubr.f32.mxu0 %v273_v24  ;;  %747 = vmatprep.mubr.f32.mxu1 %v281_v25 }
  0x81   : > { %736 = vmatmul.mubr.f32.gmra.mxu0 %v274_v26  ;;  %748 = vmatmul.mubr.f32.gmra.mxu1 %v282_v27 }
  0x82   : > { %738 = vmatprep.mubr.f32.mxu0 %v275_v28  ;;  %750 = vmatprep.mubr.f32.mxu1 %v283_v29 }
  0x85   : > { %739 = vmatmul.mubr.f32.gmra.mxu0 %v276_v30  ;;  %751 = vmatmul.mubr.f32.gmra.mxu1 %v284_v31 }
 0x139   : > { %v731_v32 = vpop.f32.mrf.mxu0  ;;  %v743_v33 = vpop.f32.mrf.mxu1 }
 0x13a   : > { %498 = vst [vmem:[%s1395_s25 + $0x8] sm:$0xff] %v731_v32  ;;  %506 = vst [vmem:[%s1395_s25 + $0x48] sm:$0xff] %v743_v33 }
 0x13b   : > { %v367_v34 = vpop.f32.mrf.mxu0  ;;  %v407_v35 = vpop.f32.mrf.mxu1 }
 0x13c   : > { %497 = vst [vmem:[%s1395_s25] sm:$0xff] %v367_v34  ;;  %505 = vst [vmem:[%s1395_s25 + $0x40] sm:$0xff] %v407_v35 }
 0x13d   : > { %v734_v36 = vpop.f32.mrf.mxu0  ;;  %v746_v37 = vpop.f32.mrf.mxu1 }
 0x13e   : > { %500 = vst [vmem:[%s1395_s25 + $0x18] sm:$0xff] %v734_v36  ;;  %508 = vst [vmem:[%s1395_s25 + $0x58] sm:$0xff] %v746_v37 }
 0x13f   : > { %v377_v38 = vpop.f32.mrf.mxu0  ;;  %v417_v39 = vpop.f32.mrf.mxu1 }
 0x140   : > { %499 = vst [vmem:[%s1395_s25 + $0x10] sm:$0xff] %v377_v38  ;;  %507 = vst [vmem:[%s1395_s25 + $0x50] sm:$0xff] %v417_v39 }
 0x141   : > { %v737_v40 = vpop.f32.mrf.mxu0  ;;  %v749_v41 = vpop.f32.mrf.mxu1 }
 0x142   : > { %502 = vst [vmem:[%s1395_s25 + $0x28] sm:$0xff] %v737_v40  ;;  %510 = vst [vmem:[%s1395_s25 + $0x68] sm:$0xff] %v749_v41 }
 0x143   : > { %v387_v42 = vpop.f32.mrf.mxu0  ;;  %v427_v43 = vpop.f32.mrf.mxu1 }
 0x144   : > { %501 = vst [vmem:[%s1395_s25 + $0x20] sm:$0xff] %v387_v42  ;;  %509 = vst [vmem:[%s1395_s25 + $0x60] sm:$0xff] %v427_v43 }
 0x145   : > { %v740_v44 = vpop.f32.mrf.mxu0  ;;  %v752_v45 = vpop.f32.mrf.mxu1 }
 0x146   : > { %504 = vst [vmem:[%s1395_s25 + $0x38] sm:$0xff] %v740_v44  ;;  %512 = vst [vmem:[%s1395_s25 + $0x78] sm:$0xff] %v752_v45 }
 0x147   : > { %v397_v46 = vpop.f32.mrf.mxu0  ;;  %v437_v47 = vpop.f32.mrf.mxu1 }
 0x148   : > { %503 = vst [vmem:[%s1395_s25 + $0x30] sm:$0xff] %v397_v46  ;;  %511 = vst [vmem:[%s1395_s25 + $0x70] sm:$0xff] %v437_v47 }
 0x149   : > { %992 = shalt.err (!%p989_p4)
}
 0x14a   : > { %s993_s28 = scalar_lea.hbm %s1415_s4, 2048  ;;  %s997_s25 = scalar_lea.hbm %s1537_s26, 24576 }
 0x14b   : > { %p994_p5 = scmp.ne.s32.totalorder %s1415_s4, %s993_s28  ;;  %p998_p3 = scmp.lt.s32.totalorder %s1415_s4, %s1537_s26 }
 0x14c   : > { %p999_p13 = scmp.lt.s32.totalorder %s997_s25, %s993_s28 }
 0x14d   : > { %p995_p10 = pnand %p994_p5, %p1538_p7 }
 0x14e   : > { %p1000_p0 = por %p999_p13, %p998_p3 }
 0x14f   : > { %p996_p12 = pneg %p995_p10 }
 0x151   : > { %p1001_p6 = pnand %p1000_p0, %p996_p12 }
 0x153   : > { %1004 = shalt.err (!%p1001_p6)
}
 0x154   : > { %s1135_s19 = smov 128   ;;  %s1136_s23 = smov 384  }
 0x155   : > { %s1137_s30 = smov 8  }
 0x156   : > { %790 = dma.vmem_to_hbm [thread:$0]  (%p1538_p7), %s1417_s6, 2048, %s1415_s4, %s1425_s21, %s1135_s19, %s1136_s23, %s1137_s30  }
 0x157 PF: > { %p804_p11 = scmp.ge.s32.totalorder %s1127_s22, 2  ;;  %s544_s3 = sand.u32 1, %s1075_s9  }
 0x158   : > { %p1539_p8 = scmp.ne.s32.totalorder %s1531_s27, 0  ;;  %s545_s5 = scalar_lea.sflag [#allocation5], %s544_s3 }
 0x15a   : > { %p800_p9 = pnand %p804_p11, %p1539_p8 }
 0x15c   : > { %p801_p1 = pneg %p800_p9 }
 0x15e   : > { %1070 = dma.done.wait (%p801_p1), %s545_s5, 2048  }
 0x15f   : > { %1072 = vsyncadd (%p801_p1), %s545_s5, 4294965248  ;;  %s21_s22 = sadd.s32 1, %s1127_s22   ;;  %s1541_s6 = sld [smem:[#allocation16_spill]] }
 0x160   : > { %p1453_p2 = scmp.ge.s32.totalorder %s21_s22, 14   ;;  %s1542_s19 = sld [smem:[#allocation13_spill]] }
 0x161   : > { %s1543_s27 = sld [smem:[#allocation14_spill]]  ;;  %s1546_s9 = smov %s1079_s10 }
 0x162   : > { %s1544_s21 = sld [smem:[#allocation15_spill]]  ;;  %s1547_s10 = smov %s1083_s11 }
 0x163   : > { %s1548_s11 = smov %s1319_s0  ;;  %s1549_s12 = smov %s1091_s13 }
 0x164   : > { %s1550_s13 = smov %s1095_s14  ;;  %s1552_s15 = smov %s1103_s16 }
 0x165   : > { %s1551_s14 = smov %s1541_s6  ;;  %s1553_s16 = smov %s1107_s17 }
 0x166   : > { %s1554_s17 = smov %s1316_s2  ;;  %s1555_s18 = smov %s1119_s20 }
 0x167   : > { %s1556_s20 = smov %s1543_s27  ;;  %20 = sbr.rel (!%p1453_p2) target bundleno = 15 (0xf), region = 94 }
 0x16c   :  { %550 = vsyncpa [#allocation4], 1 }
 0x16d   :  { %552 = vsyncpa [#allocation4 + $0x1], 1 }
 0x16e   :  { %553 = vsyncpa [#allocation7], 1 }
 0x16f   :  { %555 = vsyncpa [#allocation7 + $0x1], 1 }
 0x170   :  { %556 = vsyncpa [#allocation5], 1 }
 0x171   :  { %558 = vsyncpa [#allocation5 + $0x1], 1 }

</bundles_post_ra>
